<compile_context>
chip_gen: v5e
topology: v5e:2x2
jax: 0.10.0
libtpu: 0.0.40
codegen_flags: <defaults>
</compile_context>

<pallas_src>
import jax
import jax.numpy as jnp
from jax import lax
from jax.experimental import pallas as pl
from jax.experimental.pallas import tpu as pltpu


# Contract the last (feature) axis of both (tm, D) operands -> (tm, tm) tile.
_DN = (((1,), (1,)), ((), ()))


def _kid_tile_kernel(i_idx_ref, j_idx_ref,            # scalar-prefetch (SMEM)
                     xi_ref, xj_ref, yi_ref, yj_ref,  # (tm, D) VMEM tiles
                     o_ref):                          # (1, 8, 128) partial sums
    g = pl.program_id(0)
    i = i_idx_ref[g]
    j = j_idx_ref[g]
    is_diag = i == j

    d = xi_ref.shape[-1]
    inv_d = 1.0 / float(d)

    xi = xi_ref[...]
    xj = xj_ref[...]
    yi = yi_ref[...]
    yj = yj_ref[...]

    # Gram tiles straight on the MXU in the input dtype; f32 accumulation.
    gxx = lax.dot_general(xi, xj, _DN, preferred_element_type=jnp.float32) * inv_d + 1.0
    gyy = lax.dot_general(yi, yj, _DN, preferred_element_type=jnp.float32) * inv_d + 1.0
    gxy = lax.dot_general(xi, yj, _DN, preferred_element_type=jnp.float32) * inv_d + 1.0
    gyx = lax.dot_general(xj, yi, _DN, preferred_element_type=jnp.float32) * inv_d + 1.0

    # Degree-3 polynomial kernel, full-tile sums (no masks / iotas on N^2 data).
    sxx = jnp.sum(gxx * gxx * gxx, keepdims=True)   # (1, 1)
    syy = jnp.sum(gyy * gyy * gyy, keepdims=True)
    sxy = jnp.sum(gxy * gxy * gxy, keepdims=True)
    syx = jnp.sum(gyx * gyx * gyx, keepdims=True)

    # Symmetry: an off-diagonal (i < j) tile stands in for (i, j) and (j, i).
    sym_w = jnp.where(is_diag, 1.0, 2.0)
    xji_w = jnp.where(is_diag, 0.0, 1.0)
    diag_w = jnp.where(is_diag, 1.0, 0.0)

    # Trace (diagonal of Kxx / Kyy) from row norms; only counts on diag tiles.
    xf = xi.astype(jnp.float32)
    yf = yi.astype(jnp.float32)
    rx = jnp.sum(xf * xf, axis=1, keepdims=True) * inv_d + 1.0   # (tm, 1)
    ry = jnp.sum(yf * yf, axis=1, keepdims=True) * inv_d + 1.0
    tx = jnp.sum(rx * rx * rx, keepdims=True)
    ty = jnp.sum(ry * ry * ry, keepdims=True)

    part_xx = sym_w * sxx
    part_yy = sym_w * syy
    part_xy = sxy + xji_w * syx
    part_tx = diag_w * tx
    part_ty = diag_w * ty

    # Lane-dense (8, 128) partial-sum tile: sublane s carries the s-th partial.
    sub = lax.broadcasted_iota(jnp.int32, (8, 128), 0)
    tile = (jnp.where(sub == 0, part_xx, 0.0)
            + jnp.where(sub == 1, part_yy, 0.0)
            + jnp.where(sub == 2, part_xy, 0.0)
            + jnp.where(sub == 3, part_tx, 0.0)
            + jnp.where(sub == 4, part_ty, 0.0))
    o_ref[0] = tile


def _pick_tile(n):
    # Largest MXU-friendly row tile that divides n (256 = native v6e/v7x MXU
    # tile; 128-multiples keep the v5e 4x128 MXU fed).
    for t in (256, 128, 64, 32, 16, 8):
        if n % t == 0:
            return t
    return n  # tiny / odd n: single full-extent block


def kid_loss(features, tile_rows=None):
    """KID loss. `features` has shape (2*N, D): first half real, second half fake."""
    total, d = features.shape
    assert total % 2 == 0, "KID expects an even batch (real || fake)"
    n = total // 2
    assert n >= 2, "unbiased MMD^2 needs at least 2 samples per set"
    x = features[:n]
    y = features[n:]

    tm = tile_rows if tile_rows is not None else _pick_tile(n)
    assert n % tm == 0, f"tile_rows={tm} must divide N={n}"
    t = n // tm

    # Upper-triangular (i <= j) tile pairs, visited via scalar-prefetch tables.
    pairs = [(i, j) for i in range(t) for j in range(i, t)]
    p = len(pairs)
    i_idx = jnp.asarray([pr[0] for pr in pairs], dtype=jnp.int32)
    j_idx = jnp.asarray([pr[1] for pr in pairs], dtype=jnp.int32)

    itemsize = jnp.dtype(features.dtype).itemsize
    vmem_limit = int(4 * 2 * tm * d * itemsize      # 4 double-buffered row tiles
                     + 2 * 8 * 128 * 4              # output tile, double-buffered
                     + 8 * tm * tm * 4              # Gram-tile intermediates (f32)
                     + (2 << 20))                   # slack
    cost = pl.CostEstimate(flops=int(2 * 3 * n * n * d),
                           transcendentals=0,
                           bytes_accessed=int(2 * n * d * itemsize + p * 8 * 128 * 4))

    row_spec_i = pl.BlockSpec((tm, d), lambda g, ii, jj: (ii[g], 0))
    row_spec_j = pl.BlockSpec((tm, d), lambda g, ii, jj: (jj[g], 0))

    parts = pl.pallas_call(
        _kid_tile_kernel,
        out_shape=jax.ShapeDtypeStruct((p, 8, 128), jnp.float32),
        grid_spec=pltpu.PrefetchScalarGridSpec(
            num_scalar_prefetch=2,
            grid=(p,),
            in_specs=[row_spec_i, row_spec_j, row_spec_i, row_spec_j],
            out_specs=pl.BlockSpec((1, 8, 128), lambda g, ii, jj: (g, 0, 0)),
        ),
        compiler_params=pltpu.CompilerParams(
            dimension_semantics=("parallel",),
            vmem_limit_bytes=vmem_limit,
        ),
        cost_estimate=cost,
    )(i_idx, j_idx, x, x, y, y)

    # Tiny final reduction in JAX glue (also lets v7x's two cores emit
    # independent per-tile partials).
    sums = jnp.sum(parts[:, :, 0], axis=0)           # (8,)
    sxx, syy, sxy, tx, ty = sums[0], sums[1], sums[2], sums[3], sums[4]
    denom = float(n * (n - 1))
    return (sxx - tx) / denom + (syy - ty) / denom - 2.0 * sxy / float(n * n)


def _kid_reference(features):
    """Pure-JAX reference for sanity checking."""
    total, d = features.shape
    n = total // 2
    x, y = features[:n].astype(jnp.float32), features[n:].astype(jnp.float32)
    k = lambda a, b: (a @ b.T / d + 1.0) ** 3
    kxx, kyy, kxy = k(x, x), k(y, y), k(x, y)
    mask = 1.0 - jnp.eye(n, dtype=jnp.float32)
    return (jnp.sum(kxx * mask) / (n * (n - 1))
            + jnp.sum(kyy * mask) / (n * (n - 1))
            - 2.0 * jnp.sum(kxy) / (n * n))


if __name__ == "__main__":
    key = jax.random.PRNGKey(0)
    # Small synthetic feature batch: 2*N = 64 feature vectors, D = 128 dims.
    features = jax.random.normal(key, (64, 128), dtype=jnp.float32)

    ref = _kid_reference(features)

    # Multi-tile path: N=32 rows per set, 8-row tiles -> 4x4 upper-tri grid (10 steps).
    loss_tiled = kid_loss(features, tile_rows=8)
    jax.block_until_ready(loss_tiled)
    assert jnp.allclose(loss_tiled, ref, rtol=1e-4, atol=1e-4), (loss_tiled, ref)

    # Default tile selection (single diagonal tile at this toy size).
    loss_default = kid_loss(features)
    jax.block_until_ready(loss_default)
    assert jnp.allclose(loss_default, ref, rtol=1e-4, atol=1e-4), (loss_default, ref)

    print("KERNEL_OK")
</pallas_src>

<mosaic_0001>
module attributes {stable_mosaic.version = 11 : i64} {
  func.func @_kid_tile_kernel(%arg0: i32, %arg1: memref<10xi32, #tpu.memory_space<smem>>, %arg2: memref<10xi32, #tpu.memory_space<smem>>, %arg3: memref<8x128xf32, #tpu.memory_space<vmem>>, %arg4: memref<8x128xf32, #tpu.memory_space<vmem>>, %arg5: memref<8x128xf32, #tpu.memory_space<vmem>>, %arg6: memref<8x128xf32, #tpu.memory_space<vmem>>, %arg7: memref<1x8x128xf32, #tpu.memory_space<vmem>>) attributes {dimension_semantics = [#tpu.dimension_semantics<parallel>], iteration_bounds = array<i64: 10>, scalar_prefetch = 2 : i64, scratch_operands = 0 : i64, tpu.core_type = #tpu.core_type<tc>, window_params = [{transform_indices = @transform_0, window_bounds = array<i64: 8, 128>}, {transform_indices = @transform_1, window_bounds = array<i64: 8, 128>}, {transform_indices = @transform_2, window_bounds = array<i64: 8, 128>}, {transform_indices = @transform_3, window_bounds = array<i64: 8, 128>}, {transform_indices = @transform_4, window_bounds = array<i64: 1, 8, 128>}]} {
    %0 = arith.index_cast %arg0 : i32 to index
    %1 = memref.load %arg1[%0] : memref<10xi32, #tpu.memory_space<smem>>
    %2 = arith.index_cast %arg0 : i32 to index
    %3 = memref.load %arg2[%2] : memref<10xi32, #tpu.memory_space<smem>>
    %4 = arith.cmpi eq, %1, %3 : i32
    %c0 = arith.constant 0 : index
    %c0_0 = arith.constant 0 : index
    %5 = vector.load %arg3[%c0, %c0_0] : memref<8x128xf32, #tpu.memory_space<vmem>>, vector<8x128xf32>
    %c0_1 = arith.constant 0 : index
    %c0_2 = arith.constant 0 : index
    %6 = vector.load %arg4[%c0_1, %c0_2] : memref<8x128xf32, #tpu.memory_space<vmem>>, vector<8x128xf32>
    %c0_3 = arith.constant 0 : index
    %c0_4 = arith.constant 0 : index
    %7 = vector.load %arg5[%c0_3, %c0_4] : memref<8x128xf32, #tpu.memory_space<vmem>>, vector<8x128xf32>
    %c0_5 = arith.constant 0 : index
    %c0_6 = arith.constant 0 : index
    %8 = vector.load %arg6[%c0_5, %c0_6] : memref<8x128xf32, #tpu.memory_space<vmem>>, vector<8x128xf32>
    %cst = arith.constant dense<0.000000e+00> : vector<8x8xf32>
    %9 = tpu.matmul %5, %6, %cst {dimension_numbers = #tpu.dot_dimension_numbers<[1], [1], [0], [0], [0, 0, 1, 0], [], []>} : vector<8x128xf32>, vector<8x128xf32>, vector<8x8xf32> -> vector<8x8xf32>
    %cst_7 = arith.constant 7.812500e-03 : f32
    %10 = vector.broadcast %cst_7 : f32 to vector<8x8xf32>
    %11 = arith.mulf %9, %10 : vector<8x8xf32>
    %cst_8 = arith.constant 1.000000e+00 : f32
    %12 = vector.broadcast %cst_8 : f32 to vector<8x8xf32>
    %13 = arith.addf %11, %12 : vector<8x8xf32>
    %cst_9 = arith.constant dense<0.000000e+00> : vector<8x8xf32>
    %14 = tpu.matmul %7, %8, %cst_9 {dimension_numbers = #tpu.dot_dimension_numbers<[1], [1], [0], [0], [0, 0, 1, 0], [], []>} : vector<8x128xf32>, vector<8x128xf32>, vector<8x8xf32> -> vector<8x8xf32>
    %cst_10 = arith.constant 7.812500e-03 : f32
    %15 = vector.broadcast %cst_10 : f32 to vector<8x8xf32>
    %16 = arith.mulf %14, %15 : vector<8x8xf32>
    %cst_11 = arith.constant 1.000000e+00 : f32
    %17 = vector.broadcast %cst_11 : f32 to vector<8x8xf32>
    %18 = arith.addf %16, %17 : vector<8x8xf32>
    %cst_12 = arith.constant dense<0.000000e+00> : vector<8x8xf32>
    %19 = tpu.matmul %5, %8, %cst_12 {dimension_numbers = #tpu.dot_dimension_numbers<[1], [1], [0], [0], [0, 0, 1, 0], [], []>} : vector<8x128xf32>, vector<8x128xf32>, vector<8x8xf32> -> vector<8x8xf32>
    %cst_13 = arith.constant 7.812500e-03 : f32
    %20 = vector.broadcast %cst_13 : f32 to vector<8x8xf32>
    %21 = arith.mulf %19, %20 : vector<8x8xf32>
    %cst_14 = arith.constant 1.000000e+00 : f32
    %22 = vector.broadcast %cst_14 : f32 to vector<8x8xf32>
    %23 = arith.addf %21, %22 : vector<8x8xf32>
    %cst_15 = arith.constant dense<0.000000e+00> : vector<8x8xf32>
    %24 = tpu.matmul %6, %7, %cst_15 {dimension_numbers = #tpu.dot_dimension_numbers<[1], [1], [0], [0], [0, 0, 1, 0], [], []>} : vector<8x128xf32>, vector<8x128xf32>, vector<8x8xf32> -> vector<8x8xf32>
    %cst_16 = arith.constant 7.812500e-03 : f32
    %25 = vector.broadcast %cst_16 : f32 to vector<8x8xf32>
    %26 = arith.mulf %24, %25 : vector<8x8xf32>
    %cst_17 = arith.constant 1.000000e+00 : f32
    %27 = vector.broadcast %cst_17 : f32 to vector<8x8xf32>
    %28 = arith.addf %26, %27 : vector<8x8xf32>
    %29 = arith.mulf %13, %13 : vector<8x8xf32>
    %30 = arith.mulf %29, %13 : vector<8x8xf32>
    %31 = vector.shape_cast %30 : vector<8x8xf32> to vector<1x8x8xf32>
    %cst_18 = arith.constant dense<0.000000e+00> : vector<1xf32>
    %32 = vector.multi_reduction <add>, %31, %cst_18 [1, 2] : vector<1x8x8xf32> to vector<1xf32>
    %33 = vector.shape_cast %32 : vector<1xf32> to vector<1x1x1xf32>
    %34 = vector.extract %33[0, 0, 0] : f32 from vector<1x1x1xf32>
    %35 = vector.broadcast %34 : f32 to vector<1x1xf32>
    %36 = arith.mulf %18, %18 : vector<8x8xf32>
    %37 = arith.mulf %36, %18 : vector<8x8xf32>
    %38 = vector.shape_cast %37 : vector<8x8xf32> to vector<1x8x8xf32>
    %cst_19 = arith.constant dense<0.000000e+00> : vector<1xf32>
    %39 = vector.multi_reduction <add>, %38, %cst_19 [1, 2] : vector<1x8x8xf32> to vector<1xf32>
    %40 = vector.shape_cast %39 : vector<1xf32> to vector<1x1x1xf32>
    %41 = vector.extract %40[0, 0, 0] : f32 from vector<1x1x1xf32>
    %42 = vector.broadcast %41 : f32 to vector<1x1xf32>
    %43 = arith.mulf %23, %23 : vector<8x8xf32>
    %44 = arith.mulf %43, %23 : vector<8x8xf32>
    %45 = vector.shape_cast %44 : vector<8x8xf32> to vector<1x8x8xf32>
    %cst_20 = arith.constant dense<0.000000e+00> : vector<1xf32>
    %46 = vector.multi_reduction <add>, %45, %cst_20 [1, 2] : vector<1x8x8xf32> to vector<1xf32>
    %47 = vector.shape_cast %46 : vector<1xf32> to vector<1x1x1xf32>
    %48 = vector.extract %47[0, 0, 0] : f32 from vector<1x1x1xf32>
    %49 = vector.broadcast %48 : f32 to vector<1x1xf32>
    %50 = arith.mulf %28, %28 : vector<8x8xf32>
    %51 = arith.mulf %50, %28 : vector<8x8xf32>
    %52 = vector.shape_cast %51 : vector<8x8xf32> to vector<1x8x8xf32>
    %cst_21 = arith.constant dense<0.000000e+00> : vector<1xf32>
    %53 = vector.multi_reduction <add>, %52, %cst_21 [1, 2] : vector<1x8x8xf32> to vector<1xf32>
    %54 = vector.shape_cast %53 : vector<1xf32> to vector<1x1x1xf32>
    %55 = vector.extract %54[0, 0, 0] : f32 from vector<1x1x1xf32>
    %56 = vector.broadcast %55 : f32 to vector<1x1xf32>
    %cst_22 = arith.constant 1.000000e+00 : f32
    %cst_23 = arith.constant 2.000000e+00 : f32
    %57 = arith.select %4, %cst_22, %cst_23 : f32
    %cst_24 = arith.constant 0.000000e+00 : f32
    %cst_25 = arith.constant 1.000000e+00 : f32
    %58 = arith.select %4, %cst_24, %cst_25 : f32
    %cst_26 = arith.constant 1.000000e+00 : f32
    %cst_27 = arith.constant 0.000000e+00 : f32
    %59 = arith.select %4, %cst_26, %cst_27 : f32
    %60 = arith.mulf %5, %5 : vector<8x128xf32>
    %cst_28 = arith.constant dense<0.000000e+00> : vector<8xf32>
    %61 = vector.multi_reduction <add>, %60, %cst_28 [1] : vector<8x128xf32> to vector<8xf32>
    %62 = vector.shape_cast %61 : vector<8xf32> to vector<8x1xf32>
    %cst_29 = arith.constant 7.812500e-03 : f32
    %63 = vector.broadcast %cst_29 : f32 to vector<8x1xf32>
    %64 = arith.mulf %62, %63 : vector<8x1xf32>
    %cst_30 = arith.constant 1.000000e+00 : f32
    %65 = vector.broadcast %cst_30 : f32 to vector<8x1xf32>
    %66 = arith.addf %64, %65 : vector<8x1xf32>
    %67 = arith.mulf %7, %7 : vector<8x128xf32>
    %cst_31 = arith.constant dense<0.000000e+00> : vector<8xf32>
    %68 = vector.multi_reduction <add>, %67, %cst_31 [1] : vector<8x128xf32> to vector<8xf32>
    %69 = vector.shape_cast %68 : vector<8xf32> to vector<8x1xf32>
    %cst_32 = arith.constant 7.812500e-03 : f32
    %70 = vector.broadcast %cst_32 : f32 to vector<8x1xf32>
    %71 = arith.mulf %69, %70 : vector<8x1xf32>
    %cst_33 = arith.constant 1.000000e+00 : f32
    %72 = vector.broadcast %cst_33 : f32 to vector<8x1xf32>
    %73 = arith.addf %71, %72 : vector<8x1xf32>
    %74 = arith.mulf %66, %66 : vector<8x1xf32>
    %75 = arith.mulf %74, %66 : vector<8x1xf32>
    %76 = vector.shape_cast %75 : vector<8x1xf32> to vector<1x8x1xf32>
    %cst_34 = arith.constant dense<0.000000e+00> : vector<1xf32>
    %77 = vector.multi_reduction <add>, %76, %cst_34 [1, 2] : vector<1x8x1xf32> to vector<1xf32>
    %78 = vector.shape_cast %77 : vector<1xf32> to vector<1x1x1xf32>
    %79 = vector.extract %78[0, 0, 0] : f32 from vector<1x1x1xf32>
    %80 = vector.broadcast %79 : f32 to vector<1x1xf32>
    %81 = arith.mulf %73, %73 : vector<8x1xf32>
    %82 = arith.mulf %81, %73 : vector<8x1xf32>
    %83 = vector.shape_cast %82 : vector<8x1xf32> to vector<1x8x1xf32>
    %cst_35 = arith.constant dense<0.000000e+00> : vector<1xf32>
    %84 = vector.multi_reduction <add>, %83, %cst_35 [1, 2] : vector<1x8x1xf32> to vector<1xf32>
    %85 = vector.shape_cast %84 : vector<1xf32> to vector<1x1x1xf32>
    %86 = vector.extract %85[0, 0, 0] : f32 from vector<1x1x1xf32>
    %87 = vector.broadcast %86 : f32 to vector<1x1xf32>
    %88 = vector.broadcast %57 : f32 to vector<1x1xf32>
    %89 = arith.mulf %88, %35 : vector<1x1xf32>
    %90 = vector.broadcast %57 : f32 to vector<1x1xf32>
    %91 = arith.mulf %90, %42 : vector<1x1xf32>
    %92 = vector.broadcast %58 : f32 to vector<1x1xf32>
    %93 = arith.mulf %92, %56 : vector<1x1xf32>
    %94 = arith.addf %49, %93 : vector<1x1xf32>
    %95 = vector.broadcast %59 : f32 to vector<1x1xf32>
    %96 = arith.mulf %95, %80 : vector<1x1xf32>
    %97 = vector.broadcast %59 : f32 to vector<1x1xf32>
    %98 = arith.mulf %97, %87 : vector<1x1xf32>
    %99 = tpu.iota {dimensions = array<i32: 0>} : vector<8x128xi32>
    %c0_i32 = arith.constant 0 : i32
    %100 = vector.broadcast %c0_i32 : i32 to vector<8x128xi32>
    %101 = arith.cmpi eq, %99, %100 : vector<8x128xi32>
    %cst_36 = arith.constant 0.000000e+00 : f32
    %102 = vector.shape_cast %89 : vector<1x1xf32> to vector<1x1xf32>
    %103 = vector.broadcast %102 : vector<1x1xf32> to vector<8x128xf32>
    %104 = vector.broadcast %cst_36 : f32 to vector<8x128xf32>
    %105 = arith.select %101, %103, %104 : vector<8x128xi1>, vector<8x128xf32>
    %c1_i32 = arith.constant 1 : i32
    %106 = vector.broadcast %c1_i32 : i32 to vector<8x128xi32>
    %107 = arith.cmpi eq, %99, %106 : vector<8x128xi32>
    %cst_37 = arith.constant 0.000000e+00 : f32
    %108 = vector.shape_cast %91 : vector<1x1xf32> to vector<1x1xf32>
    %109 = vector.broadcast %108 : vector<1x1xf32> to vector<8x128xf32>
    %110 = vector.broadcast %cst_37 : f32 to vector<8x128xf32>
    %111 = arith.select %107, %109, %110 : vector<8x128xi1>, vector<8x128xf32>
    %112 = arith.addf %105, %111 : vector<8x128xf32>
    %c2_i32 = arith.constant 2 : i32
    %113 = vector.broadcast %c2_i32 : i32 to vector<8x128xi32>
    %114 = arith.cmpi eq, %99, %113 : vector<8x128xi32>
    %cst_38 = arith.constant 0.000000e+00 : f32
    %115 = vector.shape_cast %94 : vector<1x1xf32> to vector<1x1xf32>
    %116 = vector.broadcast %115 : vector<1x1xf32> to vector<8x128xf32>
    %117 = vector.broadcast %cst_38 : f32 to vector<8x128xf32>
    %118 = arith.select %114, %116, %117 : vector<8x128xi1>, vector<8x128xf32>
    %119 = arith.addf %112, %118 : vector<8x128xf32>
    %c3_i32 = arith.constant 3 : i32
    %120 = vector.broadcast %c3_i32 : i32 to vector<8x128xi32>
    %121 = arith.cmpi eq, %99, %120 : vector<8x128xi32>
    %cst_39 = arith.constant 0.000000e+00 : f32
    %122 = vector.shape_cast %96 : vector<1x1xf32> to vector<1x1xf32>
    %123 = vector.broadcast %122 : vector<1x1xf32> to vector<8x128xf32>
    %124 = vector.broadcast %cst_39 : f32 to vector<8x128xf32>
    %125 = arith.select %121, %123, %124 : vector<8x128xi1>, vector<8x128xf32>
    %126 = arith.addf %119, %125 : vector<8x128xf32>
    %c4_i32 = arith.constant 4 : i32
    %127 = vector.broadcast %c4_i32 : i32 to vector<8x128xi32>
    %128 = arith.cmpi eq, %99, %127 : vector<8x128xi32>
    %cst_40 = arith.constant 0.000000e+00 : f32
    %129 = vector.shape_cast %98 : vector<1x1xf32> to vector<1x1xf32>
    %130 = vector.broadcast %129 : vector<1x1xf32> to vector<8x128xf32>
    %131 = vector.broadcast %cst_40 : f32 to vector<8x128xf32>
    %132 = arith.select %128, %130, %131 : vector<8x128xi1>, vector<8x128xf32>
    %133 = arith.addf %126, %132 : vector<8x128xf32>
    %c0_41 = arith.constant 0 : index
    %c0_42 = arith.constant 0 : index
    %c0_43 = arith.constant 0 : index
    %134 = vector.load %arg7[%c0_41, %c0_42, %c0_43] : memref<1x8x128xf32, #tpu.memory_space<vmem>>, vector<1x8x128xf32>
    %135 = vector.shape_cast %134 : vector<1x8x128xf32> to vector<8x128xf32>
    %136 = vector.shape_cast %133 : vector<8x128xf32> to vector<1x8x128xf32>
    tpu.vector_store %arg7[%c0_41, %c0_42, %c0_43], %136 {strides = array<i32>} : memref<1x8x128xf32, #tpu.memory_space<vmem>>, vector<1x8x128xf32>,
    return
  }
  func.func @transform_0(%arg0: i32, %arg1: memref<10xi32, #tpu.memory_space<smem>>, %arg2: memref<10xi32, #tpu.memory_space<smem>>) -> (i32, i32) {
    %0 = arith.index_cast %arg0 : i32 to index
    %1 = memref.load %arg1[%0] : memref<10xi32, #tpu.memory_space<smem>>
    %c0_i32 = arith.constant 0 : i32
    %c0_i32_0 = arith.constant 0 : i32
    return %1, %c0_i32 : i32, i32
  }
  func.func @transform_1(%arg0: i32, %arg1: memref<10xi32, #tpu.memory_space<smem>>, %arg2: memref<10xi32, #tpu.memory_space<smem>>) -> (i32, i32) {
    %0 = arith.index_cast %arg0 : i32 to index
    %1 = memref.load %arg2[%0] : memref<10xi32, #tpu.memory_space<smem>>
    %c0_i32 = arith.constant 0 : i32
    %c0_i32_0 = arith.constant 0 : i32
    return %1, %c0_i32 : i32, i32
  }
  func.func @transform_2(%arg0: i32, %arg1: memref<10xi32, #tpu.memory_space<smem>>, %arg2: memref<10xi32, #tpu.memory_space<smem>>) -> (i32, i32) {
    %0 = arith.index_cast %arg0 : i32 to index
    %1 = memref.load %arg1[%0] : memref<10xi32, #tpu.memory_space<smem>>
    %c0_i32 = arith.constant 0 : i32
    %c0_i32_0 = arith.constant 0 : i32
    return %1, %c0_i32 : i32, i32
  }
  func.func @transform_3(%arg0: i32, %arg1: memref<10xi32, #tpu.memory_space<smem>>, %arg2: memref<10xi32, #tpu.memory_space<smem>>) -> (i32, i32) {
    %0 = arith.index_cast %arg0 : i32 to index
    %1 = memref.load %arg2[%0] : memref<10xi32, #tpu.memory_space<smem>>
    %c0_i32 = arith.constant 0 : i32
    %c0_i32_0 = arith.constant 0 : i32
    return %1, %c0_i32 : i32, i32
  }
  func.func @transform_4(%arg0: i32, %arg1: memref<10xi32, #tpu.memory_space<smem>>, %arg2: memref<10xi32, #tpu.memory_space<smem>>) -> (i32, i32, i32) {
    %c0_i32 = arith.constant 0 : i32
    %c0_i32_0 = arith.constant 0 : i32
    %c0_i32_1 = arith.constant 0 : i32
    return %arg0, %c0_i32, %c0_i32_0 : i32, i32, i32
  }
}

</mosaic_0001>

<bundles_post_ra>
// kernel: tpu_custom_call.1
= control target key start
LH: loop header
LB: loop body
LE: loop exit
PB: predicated region body
PF: predicated region fallthrough
CT: control target
= control target key end

     0   :  { %s1256_s27 = smov [#allocation3]   ;;  %s1257_s28 = smov [#allocation4]   ;;  %s1742_s0 = inlined_call_operand.hbm [shape: s32[10], index: 0, kind: input, shape index: {}]   ;;  %s1743_s2 = inlined_call_operand.hbm [shape: f32[32,128], index: 2, kind: input, shape index: {}]   ;;  %s1744_s3 = inlined_call_operand.hbm [shape: f32[32,128], index: 3, kind: input, shape index: {}]   ;;  %s1745_s4 = inlined_call_operand.hbm [shape: f32[32,128], index: 4, kind: input, shape index: {}]   ;;  %s1746_s5 = inlined_call_operand.hbm [shape: f32[32,128], index: 5, kind: input, shape index: {}]   ;;  %s1747_s6 = inlined_call_operand.hbm [shape: f32[10,8,128], index: 6, kind: output, shape index: {}]   ;;  %s1748_s1 = inlined_call_operand.hbm [shape: s32[10], index: 1, kind: input, shape index: {}]  }
   0x1   :  { %1767 = sst [smem:[#allocation41_spill]] %s1743_s2  ;;  %s12_s23 = sshll.u32 %s1742_s0, 4  ;;  %s13_s23 = int_to_ptr.hbm [resolvable:$true] %s12_s23 }
   0x2   :  { %1768 = sst [smem:[#allocation42_spill]] %s1744_s3  ;;  %s17_s26 = sshll.u32 %s1748_s1, 4  ;;  %s18_s26 = int_to_ptr.hbm [resolvable:$true] %s17_s26 }
   0x3   :  { %1769 = sst [smem:[#allocation43_spill]] %s1745_s4 }
   0x4   :  { %1770 = sst [smem:[#allocation44_spill]] %s1746_s5 }
   0x5   :  { %1771 = sst [smem:[#allocation45_spill]] %s1747_s6 }
   0x6   :  { %15 = dma.hbm_to_smem %s13_s23, 16, %s1256_s27, [#allocation2] }
   0x7   :  { %20 = dma.hbm_to_smem %s18_s26, 16, %s1257_s28, [#allocation2] }
   0x8   :  { %1170 = dma.done.wait [#allocation2], 32 }
   0x9   :  { %1171 = vsyncadd [#allocation2], 4294967264 }
   0xa   :  { %23 = sfence }
   0xb   :  { %24 = vsyncpa [#allocation6], 0 }
   0xc   :  { %26 = vsyncpa [#allocation6 + $0x1], 0 }
   0xd   :  { %27 = vsyncpa [#allocation9], 0 }
   0xe   :  { %29 = vsyncpa [#allocation9 + $0x1], 0 }
   0xf   :  { %30 = vsyncpa [#allocation12], 0 }
  0x10   :  { %32 = vsyncpa [#allocation12 + $0x1], 0 }
  0x11   :  { %33 = vsyncpa [#allocation7], 0 }
  0x12   :  { %35 = vsyncpa [#allocation7 + $0x1], 0  ;;  %s1299_s0 = smov 0   ;;  %s1301_s1 = smov 0  }
  0x13   :  { %s1303_s29 = smov 0   ;;  %s1305_s30 = smov 0  }
  0x14   :  { %s1307_s7 = smov 0   ;;  %s1309_s8 = smov 0  }
  0x15   :  { %s1311_s9 = smov 0   ;;  %s1313_s10 = smov 0  }
  0x16   :  { %s1315_s11 = smov 0   ;;  %s1317_s12 = smov 0  }
  0x17   :  { %s1319_s13 = smov 0   ;;  %s1321_s14 = smov 0  }
  0x18   :  { %s1323_s15 = smov 0   ;;  %s1325_s16 = smov 0  }
  0x19   :  { %s1327_s17 = smov 0   ;;  %s1329_s18 = smov 0  }
  0x1a LB: > { %1772 = sst [smem:[#allocation28_spill]] %s1194_s0  ;;  %s1378_s19 = sadd.s32 4294967295, %s1254_s18   ;;  %s1254_s18 = sphi %s1329_s18, %s1850_s18   ;;  %s1250_s17 = sphi %s1327_s17, %s1849_s17   ;;  %s1246_s16 = sphi %s1325_s16, %s1848_s16   ;;  %s1242_s15 = sphi %s1323_s15, %s1847_s15   ;;  %s1238_s14 = sphi %s1321_s14, %s1838_s14   ;;  %s1234_s13 = sphi %s1319_s13, %s1837_s13   ;;  %s1230_s12 = sphi %s1317_s12, %s1836_s12   ;;  %s1226_s11 = sphi %s1315_s11, %s1846_s11   ;;  %s1222_s10 = sphi %s1313_s10, %s1845_s10   ;;  %s1218_s9 = sphi %s1311_s9, %s1844_s9   ;;  %s1214_s8 = sphi %s1309_s8, %s1843_s8   ;;  %s1210_s7 = sphi %s1307_s7, %s1842_s7   ;;  %s1206_s30 = sphi %s1305_s30, %s1841_s30   ;;  %s1202_s29 = sphi %s1303_s29, %s1834_s29   ;;  %s1198_s1 = sphi %s1301_s1, %s1833_s1   ;;  %s1194_s0 = sphi %s1299_s0, %s1832_s0  }
  0x1b   : > { %1773 = sst [smem:[#allocation29_spill]] %s1198_s1  ;;  %s726_s20 = sadd.s32 4294967294, %s1254_s18  }
  0x1c   : > { %1774 = sst [smem:[#allocation30_spill]] %s1202_s29  ;;  %s1382_s21 = sadd.s32 1, %s1254_s18  }
  0x1d   : > { %1775 = sst [smem:[#allocation31_spill]] %s1234_s13  ;;  %p1763_p0 = scmp.eq.s32.totalorder %s1254_s18, 0 }
  0x1e   : > { %1776 = sst [smem:[#allocation32_spill]] %s1238_s14  ;;  %p1764_p1 = scmp.eq.s32.totalorder %s1378_s19, 0 }
  0x1f   : > { %1777 = sst [smem:[#allocation33_spill]] %s1250_s17  ;;  %s78_s24 = sadd.s32 1, %s1238_s14 }
  0x20   : > { %s73_s22 = sld [smem:[#allocation4 + %s1254_s18]]  ;;  %p85_p2 = scmp.ne.s32.totalorder %s1238_s14, %s1234_s13 }
  0x21   : > { %s74_s23 = sld [smem:[#allocation4 + %s1382_s21]]  ;;  %p91_p3 = scmp.ne.s32.totalorder %s1234_s13, %s1230_s12 }
  0x22   : > { %s157_s25 = ssub.s32 %s1254_s18, %s1382_s21  ;;  %s160_s26 = sadd.s32 1, %s1202_s29 }
  0x23   : > { %p1397_p4 = por %p85_p2, %p1763_p0  ;;  %p1403_p5 = por %p91_p3, %p1764_p1 }
  0x24   : > { %p158_p6 = scmp.eq.s32.totalorder %s157_s25, 0  ;;  %p170_p7 = scmp.ne.s32.totalorder %s1202_s29, %s1198_s1 }
  0x25   : > { %s1779_s28 = scalar_select %p1403_p5, 1, 0 }
  0x26   : > { %p171_p8 = scmp.eq.s32.totalorder %s1378_s19, 9  ;;  %p176_p9 = scmp.ne.s32.totalorder %s1198_s1, %s1194_s0 }
  0x27   : > { %1780 = sst [smem:[#allocation34_spill]] %s1779_s28  ;;  %s75_s12 = ssub.s32 %s73_s22, %s74_s23 }
  0x28   : > { %p177_p10 = scmp.eq.s32.totalorder %s726_s20, 9  ;;  %p76_p11 = scmp.eq.s32.totalorder %s75_s12, 0 }
  0x29   : > { %p1412_p12 = por %p171_p8, %p170_p7  ;;  %p1762_p2 = scmp.lt.s32.totalorder %s1254_s18, 10 }
  0x2a   : > { %s1417_s28 = scalar_select %p158_p6, %s1202_s29, %s160_s26  }
  0x2b   : > { %s1781_s6 = scalar_select %p1412_p12, 1, 0 }
  0x2c   : > { %1783 = sst [smem:[#allocation36_spill]] %s1417_s28  ;;  %p1422_p13 = por %p177_p10, %p176_p9 }
  0x2d   : > { %1782 = sst [smem:[#allocation35_spill]] %s1781_s6  ;;  %s217_s0 = sand.u32 1, %s1254_s18  }
  0x2e   : > { %s1420_s13 = scalar_select %p76_p11, %s1238_s14, %s78_s24  }
  0x2f   : > { %s1785_s25 = scalar_select %p1422_p13, 1, 0 }
  0x30   : > { %1784 = sst [smem:[#allocation37_spill]] %s1420_s13  ;;  %s219_s22 = sand.u32 1, %s1238_s14  }
  0x31   : > { %1786 = sst [smem:[#allocation38_spill]] %s1785_s25  ;;  %s731_s20 = sshll.u32 %s219_s22, 3 }
  0x32   : > { %p1433_p3 = pnand %p1762_p2, %p1397_p4  ;;  %p737_p6 = scmp.ge.s32.totalorder %s1254_s18, 1 }
  0x33   : > { %s762_s24 = scalar_select %p1397_p4, [#allocation4], [#allocation15] }
  0x34   : > { %s763_s26 = scalar_select %p1397_p4, %s1254_s18, 0 }
  0x35   : > { %s1852_s24 = smov (!%p1762_p2, %s762_s24), [#allocation19]  ;;  %s221_s12 = scalar_lea.vmem [#allocation8], %s731_s20 }
  0x36   : > { %s1854_s26 = smov (!%p1762_p2, %s763_s26), 0  ;;  %s1447_s22 = sshll.u32 %s221_s12, 4  ;;  %s231_s22 = int_to_ptr.vmem [resolvable:$true] %s1447_s22 }
  0x37   : > { %s222_s13 = sld [smem:[%s1852_s24 + %s1854_s26]]  ;;  %p275_p7 = scmp.lt.s32.totalorder %s1254_s18, 11 }
  0x38   : > { %s45_s27 = sld [smem:[#allocation3 + %s1254_s18]]  ;;  %p57_p4 = scmp.ne.s32.totalorder %s1250_s17, %s1246_s16 }
  0x39   : > { %p1451_p8 = pnand %p737_p6, %p275_p7  ;;  %s46_s25 = sld [smem:[#allocation3 + %s1382_s21]] }
  0x3a   : > { %s1789_s3 = sld [smem:[#allocation42_spill]]  ;;  %p1467_p10 = por %p1763_p0, %p57_p4 }
  0x3b   : > { %s1471_s26 = scalar_lea.sflag [#allocation9], %s217_s0  ;;  %p962_p6 = pneg %p1433_p3 }
  0x3d   : > { %s732_s29 = sshll.u32 %s222_s13, 3 }
  0x40   : > { %s226_s5 = scalar_lea.hbm %s1789_s3, %s732_s29 }
  0x41   : > { %s228_s20 = sshll.u32 %s226_s5, 4  ;;  %s965_s5 = scalar_lea.hbm %s1789_s3, 32  ;;  %s229_s20 = int_to_ptr.hbm [resolvable:$true] %s228_s20 }
  0x42   : > { %s958_s12 = sshra.s32 %s229_s20, 4  ;;  %s959_s12 = int_to_ptr.hbm [resolvable:$true] %s958_s12 }
  0x43   : > { %s960_s28 = scalar_lea.hbm %s959_s12, 8  ;;  %p966_p4 = scmp.lt.s32.totalorder %s959_s12, %s1789_s3 }
  0x44   : > { %p961_p11 = scmp.ne.s32.totalorder %s959_s12, %s960_s28  ;;  %p967_p0 = scmp.lt.s32.totalorder %s965_s5, %s960_s28 }
  0x46   : > { %p963_p7 = pnand %p962_p6, %p961_p11  ;;  %p968_p1 = por %p967_p0, %p966_p4 }
  0x48   : > { %p964_p2 = pneg %p963_p7 }
  0x4a   : > { %p969_p9 = pnand %p968_p1, %p964_p2 }
  0x4c   : > { %972 = shalt.err (!%p969_p9)
}
  0x4d   : > { %787 = dma.hbm_to_vmem [thread:$0]  (!%p1433_p3), %s229_s20, 128, %s231_s22, %s1471_s26  }
  0x4e   : > { %p1791_p0 = scmp.ne.s32.totalorder %s1246_s16, %s1242_s15  ;;  %p1792_p1 = scmp.eq.s32.totalorder %s1378_s19, 0 }
  0x4f   : > { %s197_s28 = sand.u32 1, %s1250_s17   ;;  %s47_s23 = ssub.s32 %s45_s27, %s46_s25 }
  0x50   : > { %p1489_p2 = por %p1792_p1, %p1791_p0  ;;  %p48_p9 = scmp.eq.s32.totalorder %s47_s23, 0 }
  0x51   : > { %s729_s12 = sshll.u32 %s197_s28, 3  ;;  %p1794_p11 = scmp.lt.s32.totalorder %s1254_s18, 10 }
  0x52   : > { %s1796_s22 = sadd.s32 1, %s1250_s17  ;;  %s201_s27 = scalar_lea.vmem [#allocation5], %s729_s12 }
  0x53   : > { %p1498_p3 = pnand %p1794_p11, %p1467_p10  ;;  %p1798_p6 = pmov %p1794_p11 }
  0x54   : > { %s1505_s20 = scalar_select %p48_p9, %s1250_s17, %s1796_s22  }
  0x55   : > { %s759_s6 = scalar_select %p1467_p10, [#allocation3], [#allocation14] }
  0x56   : > { %1797 = sst [smem:[#allocation39_spill]] %s1505_s20  ;;  %p1799_p7 = pmov %p1798_p6 }
  0x57   : > { %s760_s25 = scalar_select %p1467_p10, %s1254_s18, 0 }
  0x58   : > { %s1856_s6 = smov (!%p1798_p6, %s759_s6), [#allocation18]  ;;  %s1516_s1 = sshll.u32 %s201_s27, 4  ;;  %s211_s1 = int_to_ptr.vmem [resolvable:$true] %s1516_s1 }
  0x59   : > { %s1858_s25 = smov (!%p1799_p7, %s760_s25), 0  ;;  %s1520_s29 = sld [smem:[#allocation3 + %s1254_s18]] }
  0x5a   : > { %s202_s5 = sld [smem:[%s1856_s6 + %s1858_s25]]  ;;  %p113_p4 = scmp.ne.s32.totalorder %s1226_s11, %s1222_s10 }
  0x5b   : > { %s102_s23 = sld [smem:[#allocation3 + %s1382_s21]]  ;;  %p119_p10 = scmp.ne.s32.totalorder %s1222_s10, %s1218_s9 }
  0x5c   : > { %s1800_s2 = sld [smem:[#allocation41_spill]]  ;;  %p1801_p0 = scmp.eq.s32.totalorder %s1254_s18, 0 }
  0x5d   : > { %p1803_p9 = scmp.eq.s32.totalorder %s1378_s19, 0  ;;  %s239_s25 = sand.u32 1, %s1226_s11  }
  0x5e   : > { %p1533_p1 = por %p113_p4, %p1801_p0  ;;  %s198_s13 = scalar_lea.sflag [#allocation6], %s197_s28 }
  0x5f   : > { %p1539_p11 = por %p119_p10, %p1803_p9  ;;  %p992_p7 = pneg %p1498_p3 }
  0x60   : > { %s730_s24 = sshll.u32 %s202_s5, 3 }
  0x62   : > { %s206_s20 = scalar_lea.hbm %s1800_s2, %s730_s24 }
  0x63   : > { %s208_s27 = sshll.u32 %s206_s20, 4  ;;  %s995_s20 = scalar_lea.hbm %s1800_s2, 32  ;;  %s209_s27 = int_to_ptr.hbm [resolvable:$true] %s208_s27 }
  0x64   : > { %s988_s5 = sshra.s32 %s209_s27, 4  ;;  %s989_s5 = int_to_ptr.hbm [resolvable:$true] %s988_s5 }
  0x65   : > { %s990_s9 = scalar_lea.hbm %s989_s5, 8  ;;  %p996_p10 = scmp.lt.s32.totalorder %s989_s5, %s1800_s2 }
  0x66   : > { %p991_p6 = scmp.ne.s32.totalorder %s989_s5, %s990_s9  ;;  %p997_p0 = scmp.lt.s32.totalorder %s995_s20, %s990_s9 }
  0x68   : > { %p993_p13 = pnand %p992_p7, %p991_p6  ;;  %p998_p9 = por %p997_p0, %p996_p10 }
  0x6a   : > { %p994_p4 = pneg %p993_p13 }
  0x6c   : > { %p999_p12 = pnand %p998_p9, %p994_p4 }
  0x6e   : > { %1002 = shalt.err (!%p999_p12)
}
  0x6f   : > { %782 = dma.hbm_to_vmem [thread:$0]  (!%p1498_p3), %s209_s27, 128, %s211_s1, %s198_s13  }
  0x70   : > { %s103_s17 = ssub.s32 %s1520_s29, %s102_s23  ;;  %s733_s28 = sshll.u32 %s239_s25, 3 }
  0x71   : > { %p104_p12 = scmp.eq.s32.totalorder %s103_s17, 0  ;;  %s1805_s5 = sadd.s32 1, %s1226_s11 }
  0x72   : > { %s765_s15 = scalar_select %p1533_p1, [#allocation3], [#allocation16] }
  0x73   : > { %s1560_s9 = scalar_select %p104_p12, %s1226_s11, %s1805_s5  }
  0x74   : > { %s766_s3 = scalar_select %p1533_p1, %s1254_s18, 0 }
  0x75   : > { %1806 = sst [smem:[#allocation40_spill]] %s1560_s9  ;;  %p1807_p13 = scmp.lt.s32.totalorder %s1254_s18, 10 }
  0x76   : > { %s241_s13 = scalar_lea.vmem [#allocation10], %s733_s28  ;;  %s129_s27 = sld [smem:[#allocation4 + %s1254_s18]] }
  0x77   : > { %s1860_s15 = smov (!%p1807_p13, %s765_s15), [#allocation20]  ;;  %p1808_p6 = pmov %p1807_p13 }
  0x78   : > { %s250_s23 = sshll.u32 %s241_s13, 4  ;;  %s130_s25 = sld [smem:[#allocation4 + %s1382_s21]]  ;;  %s251_s23 = int_to_ptr.vmem [resolvable:$true] %s250_s23 }
  0x79   : > { %s1862_s3 = smov (!%p1808_p6, %s766_s3), 0  ;;  %p1809_p3 = pmov %p1808_p6 }
  0x7a   : > { %s242_s29 = sld [smem:[%s1860_s15 + %s1862_s3]]  ;;  %p147_p10 = scmp.ne.s32.totalorder %s1210_s7, %s1206_s30 }
  0x7b   : > { %p1573_p7 = pnand %p1809_p3, %p1533_p1  ;;  %s1811_s4 = sld [smem:[#allocation43_spill]] }
  0x7c   : > { %s134_s5 = sadd.s32 1, %s1214_s8  ;;  %p1812_p1 = scmp.eq.s32.totalorder %s1378_s19, 0 }
  0x7d   : > { %p1022_p12 = pneg %p1573_p7 }
  0x7e   : > { %p1589_p0 = por %p147_p10, %p1812_p1 }
  0x80   : > { %s734_s24 = sshll.u32 %s242_s29, 3 }
  0x81   : > { %s246_s17 = scalar_lea.hbm %s1811_s4, %s734_s24  ;;  %s1025_s30 = scalar_lea.hbm %s1811_s4, 32 }
  0x82   : > { %s248_s12 = sshll.u32 %s246_s17, 4  ;;  %s249_s12 = int_to_ptr.hbm [resolvable:$true] %s248_s12 }
  0x83   : > { %s1018_s28 = sshra.s32 %s249_s12, 4  ;;  %s1019_s28 = int_to_ptr.hbm [resolvable:$true] %s1018_s28 }
  0x84   : > { %s1020_s15 = scalar_lea.hbm %s1019_s28, 8  ;;  %p1026_p3 = scmp.lt.s32.totalorder %s1019_s28, %s1811_s4 }
  0x85   : > { %p1021_p9 = scmp.ne.s32.totalorder %s1019_s28, %s1020_s15  ;;  %p1027_p10 = scmp.lt.s32.totalorder %s1025_s30, %s1020_s15 }
  0x87   : > { %p1023_p13 = pnand %p1022_p12, %p1021_p9  ;;  %p1028_p1 = por %p1027_p10, %p1026_p3 }
  0x89   : > { %p1024_p6 = pneg %p1023_p13 }
  0x8b   : > { %p1029_p4 = pnand %p1028_p1, %p1024_p6 }
  0x8d   : > { %1032 = shalt.err (!%p1029_p4)
}
  0x8e   : > { %792 = dma.hbm_to_vmem [thread:$0]  (!%p1573_p7), %s249_s12, 128, %s251_s23, %s1471_s26  }
  0x8f   : > { %s131_s20 = ssub.s32 %s129_s27, %s130_s25  ;;  %p1814_p9 = scmp.eq.s32.totalorder %s1254_s18, 0 }
  0x90   : > { %p1815_p12 = scmp.ne.s32.totalorder %s1214_s8, %s1210_s7  ;;  %p132_p3 = scmp.eq.s32.totalorder %s131_s20, 0 }
  0x91   : > { %s257_s22 = sand.u32 1, %s1214_s8   ;;  %p1816_p4 = scmp.lt.s32.totalorder %s1254_s18, 10 }
  0x92   : > { %p143_p13 = por %p1815_p12, %p1814_p9  ;;  %s735_s28 = sshll.u32 %s257_s22, 3 }
  0x93   : > { %s1617_s17 = scalar_select %p132_p3, %s1214_s8, %s134_s5  }
  0x94   : > { %p1612_p6 = pnand %p1816_p4, %p143_p13  ;;  %p1818_p10 = pmov %p1816_p4 }
  0x95   : > { %s768_s15 = scalar_select %p143_p13, [#allocation4], [#allocation17] }
  0x96   : > { %s769_s3 = scalar_select %p143_p13, %s1254_s18, 0 }
  0x97   : > { %s1864_s15 = smov (!%p1818_p10, %s768_s15), [#allocation21]  ;;  %p1819_p7 = pmov %p1816_p4 }
  0x98   : > { %s261_s23 = scalar_lea.vmem [#allocation11], %s735_s28  ;;  %s1820_s30 = sld [smem:[#allocation44_spill]] }
  0x99   : > { %s1866_s3 = smov (!%p1819_p7, %s769_s3), 0  ;;  %s270_s27 = sshll.u32 %s261_s23, 4  ;;  %s271_s27 = int_to_ptr.vmem [resolvable:$true] %s270_s27 }
  0x9a   : > { %s262_s26 = sld [smem:[%s1864_s15 + %s1866_s3]]  ;;  %s258_s5 = scalar_lea.sflag [#allocation12], %s257_s22 }
  0x9b   : > { %p1052_p9 = pneg %p1612_p6 }
  0x9e   : > { %s1821_s24 = smov %s1820_s30 }
  0x9f   : > { %s1055_s3 = scalar_lea.hbm %s1821_s24, 32 }
  0xa0   : > { %s736_s25 = sshll.u32 %s262_s26, 3 }
  0xa1   : > { %s266_s13 = scalar_lea.hbm %s1820_s30, %s736_s25 }
  0xa2   : > { %s268_s20 = sshll.u32 %s266_s13, 4  ;;  %s269_s20 = int_to_ptr.hbm [resolvable:$true] %s268_s20 }
  0xa3   : > { %s1048_s4 = sshra.s32 %s269_s20, 4  ;;  %s1049_s4 = int_to_ptr.hbm [resolvable:$true] %s1048_s4 }
  0xa4   : > { %s1050_s9 = scalar_lea.hbm %s1049_s4, 8  ;;  %p1056_p3 = scmp.lt.s32.totalorder %s1049_s4, %s1821_s24 }
  0xa5   : > { %p1051_p1 = scmp.ne.s32.totalorder %s1049_s4, %s1050_s9  ;;  %p1057_p4 = scmp.lt.s32.totalorder %s1055_s3, %s1050_s9 }
  0xa7   : > { %p1053_p12 = pnand %p1052_p9, %p1051_p1  ;;  %p1058_p10 = por %p1057_p4, %p1056_p3 }
  0xa9   : > { %p1054_p13 = pneg %p1053_p12 }
  0xab   : > { %p1059_p7 = pnand %p1058_p10, %p1054_p13 }
  0xad   : > { %1062 = shalt.err (!%p1059_p7)
}
  0xae   : > { %797 = dma.hbm_to_vmem [thread:$0]  (!%p1612_p6), %s269_s20, 128, %s271_s27, %s258_s5  }
  0xaf   : > { %279 = sbr.rel (%p1451_p8) target bundleno = 546 (0x222), region = 36  ;;  %s281_s22 = sand.u32 (!%p1451_p8), 1, %s1246_s16  }
  0xb0   : > { %s738_s25 = sshll.u32 (!%p1451_p8), %s281_s22, 3  ;;  %s282_s12 = scalar_lea.sflag (!%p1451_p8), [#allocation6], %s281_s22 }
  0xb1   : > { %s285_s29 = scalar_lea.vmem (!%p1451_p8), [#allocation5], %s738_s25 }
  0xb4   : > { %1173 = dma.done.wait (%p1489_p2), %s282_s12, 128  }
  0xb5   : > { %1175 = vsyncadd (%p1489_p2), %s282_s12, 4294967168  ;;  %s1822_s4 = sld [smem:[#allocation31_spill]]  ;;  %s291_s30 = sand.u32 1, %s1378_s19  }
  0xb6   : > { %s292_s13 = scalar_lea.sflag [#allocation9], %s291_s30 }
  0xbb   : > { %s293_s1 = sand.u32 1, %s1822_s4  }
  0xbc   : > { %s739_s27 = sshll.u32 %s293_s1, 3 }
  0xbd   : > { %s295_s14 = scalar_lea.vmem [#allocation8], %s739_s27 }
  0xbe   : > { %1177 = dma.done.wait (%p1403_p5), %s292_s13, 128  }
  0xbf   : > { %1179 = vsyncadd (%p1403_p5), %s292_s13, 4294967168  ;;  %s303_s20 = sand.u32 1, %s1222_s10  }
  0xc0   : > { %s740_s5 = sshll.u32 %s303_s20, 3 }
  0xc1   : > { %s305_s15 = scalar_lea.vmem [#allocation10], %s740_s5 }
  0xc2   : > { %1181 = dma.done.wait (%p1539_p11), %s292_s13, 128  }
  0xc3   : > { %1183 = vsyncadd (%p1539_p11), %s292_s13, 4294967168  ;;  %s311_s0 = sand.u32 1, %s1210_s7  }
  0xc4   : > { %s741_s28 = sshll.u32 %s311_s0, 3  ;;  %s312_s3 = scalar_lea.sflag [#allocation12], %s311_s0 }
  0xc5   : > { %s315_s26 = scalar_lea.vmem [#allocation11], %s741_s28 }
  0xc6   : > { %1185 = dma.done.wait (%p1589_p0), %s312_s3, 128  }
  0xc7   : > { %1187 = vsyncadd (%p1589_p0), %s312_s3, 4294967168  ;;  %v364_v0 = vld [vmem:[%s295_s14] sm:$0xff]  ;;  %v363_v2 = vld [vmem:[%s285_s29] sm:$0xff]  ;;  %vm523_vm0 = vcmask 7168   ;;  %vm457_vm1 = vcmask 64512   ;;  %s1824_s2 = sld [smem:[#allocation29_spill]] }
  0xc8   : > { %v366_v1 = vld [vmem:[%s315_s26] sm:$0xff]  ;;  %382 = vmatpush.xpose.msra.mxu0 %v364_v0  ;;  %v365_v3 = vld [vmem:[%s305_s15] sm:$0xff]  ;;  %v511_v4 = vmul.f32 %v363_v2, %v363_v2  ;;  %s360_s6 = sld [smem:[#allocation3 + %s1378_s19]]  ;;  %s744_s20 = sshll.u32 %s1378_s19, 3 }
  0xc9   : > { %426 = vmatpush.xpose.msra.mxu2 %v366_v1  ;;  %448 = vmatpush.xpose.msra.mxu3 %v365_v3  ;;  %v516_v5 = vmul.f32 %v365_v3, %v365_v3  ;;  %s361_s23 = sld [smem:[#allocation4 + %s1378_s19]] }
  0xca   : > { %404 = vmatpush.xpose.msra.mxu1 %v366_v1  ;;  %512 = vadd.xlane.f32.xlu0 %v511_v4  ;;  %s1825_s0 = sld [smem:[#allocation45_spill]] }
  0xcb   : > { %383 = vmatmul.f32.vlgmr.msra.gmra.mxu0 %v363_v2  ;;  %s1827_s26 = sld [smem:[#allocation35_spill]] }
  0xcc   : > { %427 = vmatmul.f32.vlgmr.msra.gmra.mxu2 %v363_v2  ;;  %449 = vmatmul.f32.vlgmr.msra.gmra.mxu3 %v364_v0 }
  0xcd   : > { %405 = vmatmul.f32.vlgmr.msra.gmra.mxu1 %v365_v3  ;;  %s353_s9 = sand.u32 1, %s1824_s2  }
  0xce   : > { %s742_s13 = sshll.u32 %s353_s9, 3 }
  0xcf   : > { %p362_p5 = scmp.eq.s32.totalorder %s360_s6, %s361_s23  ;;  %s355_s19 = scalar_lea.vmem [#allocation13], %s742_s13 }
  0xd0   : > { %s1826_s28 = smov %s1825_s0  ;;  %s585_s3 = scalar_lea.hbm %s1825_s0, %s744_s20 }
  0xd1   : > { %s508_s22 = scalar_select %p362_p5, 1.0, 2.0 }
  0xd2   : > { %517 = vadd.xlane.f32.xlu0 %v516_v5  ;;  %s509_s29 = scalar_select %p362_p5, 0.0, 1.0 }
  0xd3   : > { %s510_s4 = scalar_select %p362_p5, 1.0, 0.0 }
  0xd4   : > { %s587_s6 = sshll.u32 %s355_s19, 4  ;;  %s589_s23 = sshll.u32 %s585_s3, 4  ;;  %s588_s6 = int_to_ptr.vmem [resolvable:$true] %s587_s6  ;;  %s590_s23 = int_to_ptr.hbm [resolvable:$true] %s589_s23 }
  0xd5   : > { %p1828_p2 = scmp.ne.s32.totalorder %s1827_s26, 0 }
 0x13d   : > { %v513_v6 = vpop.xlane.xlu0 %512 }
 0x13e   : > { %v514_v7 = vmul.f32 0.0078125, %v513_v6 }
 0x140   : > { %v515_v8 = vadd.f32 1.0, %v514_v7 }
 0x142   : > { %v521_v9 = vmul.f32 %v515_v8, %v515_v8 }
 0x144   : > { %v522_v10 = vmul.f32 %v521_v9, %v515_v8 }
 0x145   : > { %v518_v18 = vpop.xlane.xlu0 %517 }
 0x146   : > { %v524_v11 = vsel %vm523_vm0, %v522_v10, 0.0  ;;  %v519_v25 = vmul.f32 0.0078125, %v518_v18 }
 0x147   : > { %525 = vadd.xlane.f32.xlu0 %v524_v11 }
 0x148   : > { %v384_v12 = vpop.f32.mrf.mxu0  ;;  %v520_v32 = vadd.f32 1.0, %v519_v25 }
 0x149   : > { %v387_v13 = vmul.f32 0.0078125, %v384_v12 }
 0x14a   : > { %v406_v14 = vpop.f32.mrf.mxu1  ;;  %v535_v35 = vmul.f32 %v520_v32, %v520_v32 }
 0x14b   : > { %v409_v15 = vmul.f32 0.0078125, %v406_v14  ;;  %v388_v16 = vadd.f32 1.0, %v387_v13 }
 0x14c   : > { %v536_v39 = vmul.f32 %v535_v35, %v520_v32 }
 0x14d   : > { %v410_v17 = vadd.f32 1.0, %v409_v15  ;;  %v455_v19 = vmul.f32 %v388_v16, %v388_v16 }
 0x14e   : > { %v537_v41 = vsel %vm523_vm0, %v536_v39, 0.0 }
 0x14f   : > { %v428_v20 = vpop.f32.mrf.mxu2  ;;  %v469_v22 = vmul.f32 %v410_v17, %v410_v17  ;;  %v456_v23 = vmul.f32 %v455_v19, %v388_v16  ;;  %v450_v24 = vpop.f32.mrf.mxu3 }
 0x150   : > { %v431_v21 = vmul.f32 0.0078125, %v428_v20  ;;  %v453_v26 = vmul.f32 0.0078125, %v450_v24  ;;  %v557_v20 = vlaneseq }
 0x151   : > { %v458_v28 = vsel %vm457_vm1, %v456_v23, 0.0  ;;  %v470_v30 = vmul.f32 %v469_v22, %v410_v17  ;;  %v548_v23 = vstv %s508_s22  ;;  %s575_s22 = scalar_lea.sflag [#allocation7], %s353_s9 }
 0x152   : > { %v432_v27 = vadd.f32 1.0, %v431_v21  ;;  %459 = vadd.xlane.f32.xlu1 %v458_v28  ;;  %v454_v31 = vadd.f32 1.0, %v453_v26  ;;  %v558_v24 = vshrl.u32 %v557_v20, 7  ;;  %v551_v26 = vstv %s509_s29 }
 0x153   : > { %v471_v37 = vsel %vm457_vm1, %v470_v30, 0.0 }
 0x154   : > { %v482_v29 = vmul.f32 %v432_v27, %v432_v27  ;;  %v495_v34 = vmul.f32 %v454_v31, %v454_v31  ;;  %vm561_vm2 = vcmp.eq.s32.totalorder %v558_v24, 1  ;;  %vm559_vm3 = vcmp.eq.s32.totalorder %v558_v24, 0 }
 0x155   : > { %vm564_vm4 = vcmp.eq.s32.totalorder %v558_v24, 2  ;;  %vm567_vm5 = vcmp.eq.s32.totalorder %v558_v24, 3  ;;  %vm570_vm6 = vcmp.eq.s32.totalorder %v558_v24, 4 }
 0x156   : > { %v483_v33 = vmul.f32 %v482_v29, %v432_v27  ;;  %v496_v38 = vmul.f32 %v495_v34, %v454_v31  ;;  %v554_v29 = vstv %s510_s4 }
 0x158   : > { %v484_v36 = vsel %vm457_vm1, %v483_v33, 0.0  ;;  %v497_v40 = vsel %vm457_vm1, %v496_v38, 0.0 }
 0x159   : > { %485 = vadd.xlane.f32.xlu2 %v484_v36 }
 0x15a   : > { %472 = vadd.xlane.f32.xlu1 %v471_v37 }
 0x161   : > { %498 = vadd.xlane.f32.xlu2 %v497_v40 }
 0x162   : > { %538 = vadd.xlane.f32.xlu1 %v537_v41 }
 0x1ba   : > { %v526_v45 = vpop.xlane.xlu0 %525 }
 0x1bb   : > { %v527_v47 = vrot.slane %v526_v45, 4 }
 0x1bd   : > { %v528_v55 = vadd.f32 %v527_v47, %v526_v45 }
 0x1bf   : > { %v529_v61 = vrot.slane %v528_v55, 2 }
 0x1c1   : > { %v530_v6 = vadd.f32 %v529_v61, %v528_v55 }
 0x1c3   : > { %v531_v13 = vrot.slane %v530_v6, 1 }
 0x1c5   : > { %v460_v42 = vpop.xlane.xlu1 %459  ;;  %v532_v18 = vadd.f32 %v531_v13, %v530_v6 }
 0x1c6   : > { %v461_v43 = vrot.slane %v460_v42, 4 }
 0x1c8   : > { %v462_v44 = vadd.f32 %v461_v43, %v460_v42 }
 0x1ca   : > { %v463_v46 = vrot.slane %v462_v44, 2 }
 0x1cc   : > { %v486_v48 = vpop.xlane.xlu2 %485  ;;  %v464_v50 = vadd.f32 %v463_v46, %v462_v44 }
 0x1cd   : > { %v487_v49 = vrot.slane %v486_v48, 4  ;;  %v473_v51 = vpop.xlane.xlu1 %472 }
 0x1ce   : > { %v474_v53 = vrot.slane %v473_v51, 4  ;;  %v465_v54 = vrot.slane %v464_v50, 1 }
 0x1cf   : > { %v488_v52 = vadd.f32 %v487_v49, %v486_v48 }
 0x1d0   : > { %v475_v57 = vadd.f32 %v474_v53, %v473_v51  ;;  %v466_v58 = vadd.f32 %v465_v54, %v464_v50 }
 0x1d1   : > { %v489_v56 = vrot.slane %v488_v52, 2 }
 0x1d2   : > { %v476_v59 = vrot.slane %v475_v57, 2  ;;  %747 = vpush %v466_v58 }
 0x1d3   : > { %v490_v60 = vadd.f32 %v489_v56, %v488_v52 }
 0x1d4   : > { %v499_v62 = vpop.xlane.xlu2 %498  ;;  %v477_v0 = vadd.f32 %v476_v59, %v475_v57 }
 0x1d5   : > { %v500_v63 = vrot.slane %v499_v62, 4  ;;  %v539_v1 = vpop.xlane.xlu1 %538  ;;  %v491_v2 = vrot.slane %v490_v60, 1 }
 0x1d6   : > { %v540_v4 = vrot.slane %v539_v1, 4  ;;  %v478_v5 = vrot.slane %v477_v0, 1 }
 0x1d7   : > { %v501_v3 = vadd.f32 %v500_v63, %v499_v62  ;;  %v492_v10 = vadd.f32 %v491_v2, %v490_v60 }
 0x1d8   : > { %v541_v8 = vadd.f32 %v540_v4, %v539_v1  ;;  %v479_v9 = vadd.f32 %v478_v5, %v477_v0 }
 0x1d9   : > { %v502_v7 = vrot.slane %v501_v3, 2 }
 0x1da   : > { %v542_v12 = vrot.slane %v541_v8, 2  ;;  %749 = vpush %v479_v9 }
 0x1db   : > { %v503_v11 = vadd.f32 %v502_v7, %v501_v3  ;;  %751 = vpush %v492_v10 }
 0x1dc   : > { %v543_v14 = vadd.f32 %v542_v12, %v541_v8 }
 0x1dd   : > { %v504_v15 = vrot.slane %v503_v11, 1 }
 0x1de   : > { %v544_v17 = vrot.slane %v543_v14, 1 }
 0x1df   : > { %v505_v16 = vadd.f32 %v504_v15, %v503_v11 }
 0x1e0   : > { %v545_v19 = vadd.f32 %v544_v17, %v543_v14 }
 0x1e1   : > { %753 = vpush %v505_v16 }
 0x1e2   : > { %755 = vpush %v532_v18 }
 0x1e3   : > { %757 = vpush %v545_v19 }
 0x203   : > { %s748_s25 = spop %747 }
 0x204   : > { %v468_v22 = vstv %s748_s25  ;;  %s1092_s25 = sshra.s32 %s590_s23, 4  ;;  %s1093_s25 = int_to_ptr.hbm [resolvable:$true] %s1092_s25 }
 0x205   : > { %v549_v27 = vmul.f32 %v548_v23, %v468_v22  ;;  %p1099_p6 = scmp.lt.s32.totalorder %s1093_s25, %s1826_s28 }
 0x207   : > { %v560_v35 = vsel %vm559_vm3, %v549_v27, 0.0 }
 0x20b   : > { %s750_s12 = spop %749 }
 0x20c   : > { %v481_v21 = vstv %s750_s12  ;;  %s752_s30 = spop %751  ;;  %s1094_s12 = scalar_lea.hbm %s1093_s25, 8 }
 0x20d   : > { %v550_v25 = vmul.f32 %v548_v23, %v481_v21  ;;  %v494_v33 = vstv %s752_s30  ;;  %p1095_p8 = scmp.ne.s32.totalorder %s1093_s25, %s1094_s12  ;;  %s1098_s30 = scalar_lea.hbm %s1826_s28, 80 }
 0x20e   : > { %p1100_p1 = scmp.lt.s32.totalorder %s1098_s30, %s1094_s12 }
 0x20f   : > { %v562_v30 = vsel %vm561_vm2, %v550_v25, 0.0  ;;  %p1096_p11 = pnand %p1095_p8, %p1828_p2 }
 0x210   : > { %v563_v38 = vadd.f32 %v562_v30, %v560_v35  ;;  %p1101_p9 = por %p1100_p1, %p1099_p6 }
 0x211   : > { %p1097_p0 = pneg %p1096_p11 }
 0x212   : > { %s754_s1 = spop %753 }
 0x213   : > { %v507_v28 = vstv %s754_s1  ;;  %s756_s27 = spop %755  ;;  %p1102_p12 = pnand %p1101_p9, %p1097_p0 }
 0x214   : > { %v552_v31 = vmul.f32 %v551_v26, %v507_v28  ;;  %v534_v32 = vstv %s756_s27  ;;  %s758_s14 = spop %757 }
 0x215   : > { %v547_v34 = vstv %s758_s14  ;;  %v555_v37 = vmul.f32 %v554_v29, %v534_v32 }
 0x216   : > { %v553_v36 = vadd.f32 %v552_v31, %v494_v33  ;;  %v556_v40 = vmul.f32 %v554_v29, %v547_v34 }
 0x217   : > { %v568_v42 = vsel %vm567_vm5, %v555_v37, 0.0 }
 0x218   : > { %v565_v39 = vsel %vm564_vm4, %v553_v36, 0.0  ;;  %v571_v44 = vsel %vm570_vm6, %v556_v40, 0.0 }
 0x219   : > { %v566_v41 = vadd.f32 %v565_v39, %v563_v38 }
 0x21b   : > { %v569_v43 = vadd.f32 %v568_v42, %v566_v41 }
 0x21d   : > { %v572_v45 = vadd.f32 %v571_v44, %v569_v43 }
 0x21f   : > { %573 = vst [vmem:[%s355_s19] sm:$0xff] %v572_v45 }
 0x220   : > { %1105 = shalt.err (!%p1102_p12)
}
 0x221   : > { %775 = dma.vmem_to_hbm [thread:$0]  (%p1828_p2), %s588_s6, 128, %s590_s23, %s575_s22  }
 0x222 PF: > { %s1829_s2 = sld [smem:[#allocation28_spill]]  ;;  %p803_p13 = scmp.ge.s32.totalorder %s1254_s18, 2 }
 0x223   : > { %s1830_s9 = sld [smem:[#allocation38_spill]] }
 0x228   : > { %s601_s13 = sand.u32 1, %s1829_s2  }
 0x229   : > { %p1831_p3 = scmp.ne.s32.totalorder %s1830_s9, 0  ;;  %s602_s14 = scalar_lea.sflag [#allocation7], %s601_s13 }
 0x22b   : > { %p799_p4 = pnand %p803_p13, %p1831_p3 }
 0x22d   : > { %p800_p10 = pneg %p799_p4 }
 0x22f   : > { %1189 = dma.done.wait (%p800_p10), %s602_s14, 128  }
 0x230   : > { %1191 = vsyncadd (%p800_p10), %s602_s14, 4294967168  ;;  %s1832_s0 = sld [smem:[#allocation29_spill]]  ;;  %p38_p7 = scmp.ge.s32.totalorder %s1382_s21, 12  }
 0x231   : > { %s1833_s1 = sld [smem:[#allocation30_spill]]  ;;  %s1841_s30 = smov %s1210_s7 }
 0x232   : > { %s1834_s29 = sld [smem:[#allocation36_spill]]  ;;  %s1842_s7 = smov %s1214_s8 }
 0x233   : > { %s1835_s20 = sld [smem:[#allocation40_spill]]  ;;  %s1843_s8 = smov %s1617_s17 }
 0x234   : > { %s1836_s12 = sld [smem:[#allocation31_spill]]  ;;  %s1844_s9 = smov %s1222_s10 }
 0x235   : > { %s1837_s13 = sld [smem:[#allocation32_spill]]  ;;  %s1845_s10 = smov %s1226_s11 }
 0x236   : > { %s1838_s14 = sld [smem:[#allocation37_spill]]  ;;  %s1847_s15 = smov %s1246_s16 }
 0x237   : > { %s1839_s18 = sld [smem:[#allocation33_spill]] }
 0x238   : > { %s1840_s5 = sld [smem:[#allocation39_spill]] }
 0x239   : > { %s1846_s11 = smov %s1835_s20 }
 0x23a   :  { %40 = sbr.rel (!%p38_p7) target bundleno = 26 (0x1a), region = 118 }
 0x23d   : > { %s1848_s16 = smov %s1839_s18  ;;  %s1850_s18 = smov %s1382_s21 }
 0x23e   : > { %s1849_s17 = smov %s1840_s5 }
 0x23f   :  { %608 = vsyncpa [#allocation6], 1 }
 0x240   :  { %610 = vsyncpa [#allocation6 + $0x1], 1 }
 0x241   :  { %611 = vsyncpa [#allocation9], 1 }
 0x242   :  { %613 = vsyncpa [#allocation9 + $0x1], 1 }
 0x243   :  { %614 = vsyncpa [#allocation12], 1 }
 0x244   :  { %616 = vsyncpa [#allocation12 + $0x1], 1 }
 0x245   :  { %617 = vsyncpa [#allocation7], 1 }
 0x246   :  { %619 = vsyncpa [#allocation7 + $0x1], 1 }

</bundles_post_ra>
